<compile_context>
chip_gen: v7x
topology: tpu7x:2x2x1
jax: 0.10.0
libtpu: 0.0.40
codegen_flags: <defaults>
</compile_context>

<pallas_src>
import functools

import jax
import jax.numpy as jnp
from jax import lax
from jax.experimental import pallas as pl
from jax.experimental.pallas import tpu as pltpu


def _round_up(x, m):
    return (x + m - 1) // m * m


def _cdiv(a, b):
    return (a + b - 1) // b


def _vmem_capacity_bytes():
    try:
        cap = getattr(pltpu.get_tpu_info(), "vmem_capacity_bytes", None)
        if cap:
            return int(cap)
    except Exception:
        pass
    return 64 * 1024 * 1024  # v7x per-TensorCore floor (safe everywhere)


# ---------------------------------------------------------------------------
# Pallas kernel: fused (x + PE) @ W + b  ->  log_softmax   (one batch tile)
# ---------------------------------------------------------------------------
def encoder_kernel(x_ref, table_ref, w_ref, b_ref, out_ref, *,
                   tile_b, d_out, enable_pe):
    x = x_ref[...]                                    # (TB, Dp), native dtype

    if enable_pe:
        # Regenerate the sinusoid table rows for this tile in-kernel.
        # Single sin per element: cos(a) == sin(a + pi/2), phase row carries it.
        row0 = (pl.program_id(0) * tile_b).astype(jnp.float32)
        pos = row0 + lax.broadcasted_iota(jnp.int32, x.shape, 0).astype(jnp.float32)
        angle = pos * table_ref[0:1, :] + table_ref[1:2, :]   # (1,Dp) broadcasts
        pe = jnp.sin(angle)                                    # EUP
        x = (x.astype(jnp.float32) + pe).astype(x_ref.dtype)

    # TODO(synk): encoder_layer stack (n injected layers) has no definition in
    # the source file; it is left as identity rather than faked.

    # Generator: Linear(d_model, d_out) then log_softmax(dim=-1).
    logits = jnp.dot(x, w_ref[...], preferred_element_type=jnp.float32)
    logits = logits + b_ref[...]

    d_out_pad = logits.shape[-1]
    if d_out != d_out_pad:
        # Mask the zero-padded lanes so they don't perturb the softmax sum.
        col = lax.broadcasted_iota(jnp.int32, logits.shape, 1)
        logits = jnp.where(col < d_out, logits, -jnp.inf)

    m = jnp.max(logits, axis=-1, keepdims=True)
    shifted = logits - m
    lse = jnp.log(jnp.sum(jnp.exp(shifted), axis=-1, keepdims=True))
    out_ref[...] = (shifted - lse).astype(out_ref.dtype)


# ---------------------------------------------------------------------------
# Wrapper: padding, generation-aware tiling, pallas_call
# ---------------------------------------------------------------------------
def encoder_forward(x, w, b, *, enable_positional_encoding=True, pe_max_len=64):
    B, D = x.shape
    d_out = w.shape[1]

    if enable_positional_encoding and B > pe_max_len:
        # The PyTorch module's fixed max_len=64 table would break the broadcast
        # in `x + encoding[:B]`; match that by erroring instead of diverging.
        raise ValueError(f"batch {B} exceeds positional-encoding max_len {pe_max_len}")

    out_dtype = x.dtype
    x_bytes = jnp.dtype(x.dtype).itemsize
    w_bytes = jnp.dtype(w.dtype).itemsize
    out_bytes = jnp.dtype(out_dtype).itemsize

    # Lane-dense output and contraction dims.
    d_out_pad = _round_up(d_out, 128)
    D_pad = D if D % 128 == 0 else _round_up(D, 128)

    # bf16 packs 16 rows per sublane tile; f32 packs 8.
    sub = 16 if x.dtype == jnp.bfloat16 else 8

    # --- generation-aware VMEM budget -> batch tile size ------------------
    vmem_cap = _vmem_capacity_bytes()
    budget = int(0.6 * vmem_cap)
    fixed = (D_pad * d_out_pad * w_bytes          # W (single-buffered, resident)
             + 2 * D_pad * 4                      # freq/phase table
             + d_out_pad * 4)                     # bias
    per_row = 2 * D_pad * x_bytes + 2 * d_out_pad * out_bytes  # double-buffered x + out
    max_rows = max(sub, (budget - fixed) // max(per_row, 1))
    max_rows = max(sub, (max_rows // sub) * sub)
    max_rows = min(max_rows, 2048)
    # TODO(synk): if W plus a single logits tile alone exceed the VMEM budget
    # (vocab-sized d_out), a second grid axis over d_out with an online
    # log-sum-exp would be required; not implemented here.

    # Balanced tiling: >=2 grid steps when B allows (v7x has 2 TensorCores),
    # minimal batch padding (avoid a large jnp.pad HBM round-trip for x).
    min_tiles = 2 if B > sub else 1
    num_tiles = max(min_tiles, _cdiv(B, max_rows))
    tile_b = _round_up(_cdiv(B, num_tiles), sub)
    num_tiles = _cdiv(B, tile_b)
    B_pad = tile_b * num_tiles

    if B_pad != B or D_pad != D:
        x_p = jnp.pad(x, ((0, B_pad - B), (0, D_pad - D)))
    else:
        x_p = x
    if D_pad != D or d_out_pad != d_out:
        w_p = jnp.pad(w, ((0, D_pad - D), (0, d_out_pad - d_out)))
    else:
        w_p = w
    b_p = b if d_out_pad == d_out else jnp.pad(b, ((0, d_out_pad - d_out),))
    b2d = b_p.reshape(1, d_out_pad)

    # Resident (2, D_pad) table: row 0 = 1/10000**(2i/d_model), row 1 = phase
    # (0 for even columns, pi/2 for odd).  Padded columns are zeroed (their
    # W rows are also zero, so they never reach the logits).
    col = jnp.arange(D_pad)
    two_i = (col - (col % 2)).astype(jnp.float32)
    inv_freq = jnp.where(col < D, 1.0 / jnp.power(10000.0, two_i / D), 0.0)
    phase = jnp.where((col % 2 == 1) & (col < D), jnp.float32(jnp.pi / 2), 0.0)
    table = jnp.stack([inv_freq, phase]).astype(jnp.float32)

    usage = fixed + per_row * tile_b
    vmem_limit = int(min(0.9 * vmem_cap, max(2 * usage + (4 << 20), 16 << 20)))

    kernel = functools.partial(
        encoder_kernel, tile_b=tile_b, d_out=d_out,
        enable_pe=bool(enable_positional_encoding))

    def _run(single_buffer_resident):
        rk = {"pipeline_mode": pl.Buffered(1)} if single_buffer_resident else {}
        return pl.pallas_call(
            kernel,
            out_shape=jax.ShapeDtypeStruct((B_pad, d_out_pad), out_dtype),
            grid=(num_tiles,),
            in_specs=[
                pl.BlockSpec((tile_b, D_pad), lambda i: (i, 0)),       # x (streamed)
                pl.BlockSpec((2, D_pad), lambda i: (0, 0), **rk),      # freq/phase
                pl.BlockSpec((D_pad, d_out_pad), lambda i: (0, 0), **rk),  # W
                pl.BlockSpec((1, d_out_pad), lambda i: (0, 0), **rk),  # bias
            ],
            out_specs=pl.BlockSpec((tile_b, d_out_pad), lambda i: (i, 0)),
            compiler_params=pltpu.CompilerParams(
                dimension_semantics=("parallel",),      # shards grid over 2 TCs on v7x
                vmem_limit_bytes=vmem_limit),
        )(x_p, table, w_p, b2d)

    try:
        out = _run(True)
    except Exception:
        # TODO(synk): pl.Buffered(1) single-buffering of the resident operands is
        # unsupported on this JAX version; fall back to default double-buffering.
        out = _run(False)

    return out[:B, :d_out]


# ---------------------------------------------------------------------------
# Pure-JAX reference (mirrors the PyTorch module)
# ---------------------------------------------------------------------------
def make_positional_encoding(max_len, d_model):
    pos = jnp.arange(max_len, dtype=jnp.float32)[:, None]              # (L, 1)
    _2i = jnp.arange(0, d_model, 2, dtype=jnp.float32)                 # (D/2,)
    angle = pos / jnp.power(10000.0, _2i / d_model)                    # (L, D/2)
    enc = jnp.zeros((max_len, d_model), dtype=jnp.float32)
    enc = enc.at[:, 0::2].set(jnp.sin(angle))
    enc = enc.at[:, 1::2].set(jnp.cos(angle))
    return enc


def encoder_reference(x, w, b, enable_positional_encoding=True, max_len=64):
    B, D = x.shape
    y = x + make_positional_encoding(max_len, D)[:B, :D] if enable_positional_encoding else x
    logits = y @ w + b
    return jax.nn.log_softmax(logits, axis=-1)


if __name__ == "__main__":
    key = jax.random.PRNGKey(0)
    k_x, k_w, k_b = jax.random.split(key, 3)

    # Small shapes consistent with the module: x is (batch, d_model)
    batch, d_model, d_out = 8, 32, 16

    x = jax.random.normal(k_x, (batch, d_model), dtype=jnp.float32)
    w = jax.random.normal(k_w, (d_model, d_out), dtype=jnp.float32) * 0.1
    b = jax.random.normal(k_b, (d_out,), dtype=jnp.float32) * 0.1

    out = jax.block_until_ready(
        encoder_forward(x, w, b, enable_positional_encoding=True))
    ref = encoder_reference(x, w, b, enable_positional_encoding=True)
    assert out.shape == (batch, d_out)
    assert jnp.allclose(out, ref, atol=1e-4, rtol=1e-4), "mismatch vs reference (PE on)"

    out2 = jax.block_until_ready(
        encoder_forward(x, w, b, enable_positional_encoding=False))
    ref2 = encoder_reference(x, w, b, enable_positional_encoding=False)
    assert jnp.allclose(out2, ref2, atol=1e-4, rtol=1e-4), "mismatch vs reference (PE off)"

    print("KERNEL_OK")
</pallas_src>

<mosaic_0001>
module attributes {stable_mosaic.version = 11 : i64} {
  func.func @encoder_kernel(%arg0: i32, %arg1: memref<8x128xf32, #tpu.memory_space<vmem>>, %arg2: memref<2x128xf32, #tpu.memory_space<vmem>>, %arg3: memref<128x128xf32, #tpu.memory_space<vmem>>, %arg4: memref<1x128xf32, #tpu.memory_space<vmem>>, %arg5: memref<8x128xf32, #tpu.memory_space<vmem>>) attributes {dimension_semantics = [#tpu.dimension_semantics<parallel>], iteration_bounds = array<i64: 1>, scalar_prefetch = 0 : i64, scratch_operands = 0 : i64, tpu.core_type = #tpu.core_type<tc>, window_params = [{transform_indices = @transform_0, window_bounds = array<i64: 8, 128>}, {pipeline_mode = #tpu.pipeline_mode<synchronous>, transform_indices = @transform_1, window_bounds = array<i64: 2, 128>}, {pipeline_mode = #tpu.pipeline_mode<synchronous>, transform_indices = @transform_2, window_bounds = array<i64: 128, 128>}, {pipeline_mode = #tpu.pipeline_mode<synchronous>, transform_indices = @transform_3, window_bounds = array<i64: 1, 128>}, {transform_indices = @transform_4, window_bounds = array<i64: 8, 128>}]} {
    %c0 = arith.constant 0 : index
    %c0_0 = arith.constant 0 : index
    %0 = vector.load %arg1[%c0, %c0_0] : memref<8x128xf32, #tpu.memory_space<vmem>>, vector<8x128xf32>
    %c8_i32 = arith.constant 8 : i32
    %1 = arith.muli %arg0, %c8_i32 : i32
    %2 = arith.sitofp %1 : i32 to f32
    %3 = tpu.iota {dimensions = array<i32: 0>} : vector<8x128xi32>
    %4 = arith.sitofp %3 : vector<8x128xi32> to vector<8x128xf32>
    %5 = vector.broadcast %2 : f32 to vector<8x128xf32>
    %6 = arith.addf %5, %4 : vector<8x128xf32>
    %c0_1 = arith.constant 0 : index
    %c0_2 = arith.constant 0 : index
    %7 = vector.load %arg2[%c0_1, %c0_2] : memref<2x128xf32, #tpu.memory_space<vmem>>, vector<1x128xf32>
    %8 = vector.broadcast %7 : vector<1x128xf32> to vector<8x128xf32>
    %9 = arith.mulf %6, %8 : vector<8x128xf32>
    %c1 = arith.constant 1 : index
    %c0_3 = arith.constant 0 : index
    %10 = vector.load %arg2[%c1, %c0_3] : memref<2x128xf32, #tpu.memory_space<vmem>>, vector<1x128xf32>
    %11 = vector.broadcast %10 : vector<1x128xf32> to vector<8x128xf32>
    %12 = arith.addf %9, %11 : vector<8x128xf32>
    %13 = math.sin %12 : vector<8x128xf32>
    %14 = arith.addf %0, %13 : vector<8x128xf32>
    %c0_4 = arith.constant 0 : index
    %c0_5 = arith.constant 0 : index
    %15 = vector.load %arg3[%c0_4, %c0_5] : memref<128x128xf32, #tpu.memory_space<vmem>>, vector<128x128xf32>
    %cst = arith.constant dense<0.000000e+00> : vector<8x128xf32>
    %16 = tpu.matmul %14, %15, %cst {dimension_numbers = #tpu.dot_dimension_numbers<[1], [0], [0], [1], [0, 0, 1, 1], [], []>} : vector<8x128xf32>, vector<128x128xf32>, vector<8x128xf32> -> vector<8x128xf32>
    %c0_6 = arith.constant 0 : index
    %c0_7 = arith.constant 0 : index
    %17 = vector.load %arg4[%c0_6, %c0_7] : memref<1x128xf32, #tpu.memory_space<vmem>>, vector<1x128xf32>
    %18 = vector.broadcast %17 : vector<1x128xf32> to vector<8x128xf32>
    %19 = arith.addf %16, %18 : vector<8x128xf32>
    %20 = tpu.iota {dimensions = array<i32: 1>} : vector<8x128xi32>
    %c16_i32 = arith.constant 16 : i32
    %21 = vector.broadcast %c16_i32 : i32 to vector<8x128xi32>
    %22 = arith.cmpi slt, %20, %21 : vector<8x128xi32>
    %cst_8 = arith.constant 0xFF800000 : f32
    %23 = vector.broadcast %cst_8 : f32 to vector<8x128xf32>
    %24 = arith.select %22, %19, %23 : vector<8x128xi1>, vector<8x128xf32>
    %cst_9 = arith.constant dense<0xFF800000> : vector<8xf32>
    %25 = vector.multi_reduction <maximumf>, %24, %cst_9 [1] : vector<8x128xf32> to vector<8xf32>
    %26 = vector.shape_cast %25 : vector<8xf32> to vector<8x1xf32>
    %27 = vector.broadcast %26 : vector<8x1xf32> to vector<8x128xf32>
    %28 = arith.subf %24, %27 : vector<8x128xf32>
    %29 = math.exp %28 : vector<8x128xf32>
    %cst_10 = arith.constant dense<0.000000e+00> : vector<8xf32>
    %30 = vector.multi_reduction <add>, %29, %cst_10 [1] : vector<8x128xf32> to vector<8xf32>
    %31 = vector.shape_cast %30 : vector<8xf32> to vector<8x1xf32>
    %32 = math.log %31 : vector<8x1xf32>
    %33 = vector.broadcast %32 : vector<8x1xf32> to vector<8x128xf32>
    %34 = arith.subf %28, %33 : vector<8x128xf32>
    %c0_11 = arith.constant 0 : index
    %c0_12 = arith.constant 0 : index
    %35 = vector.load %arg5[%c0_11, %c0_12] : memref<8x128xf32, #tpu.memory_space<vmem>>, vector<8x128xf32>
    tpu.vector_store %arg5[%c0_11, %c0_12], %34 {strides = array<i32>} : memref<8x128xf32, #tpu.memory_space<vmem>>, vector<8x128xf32>,
    return
  }
  func.func @transform_0(%arg0: i32) -> (i32, i32) {
    %c0_i32 = arith.constant 0 : i32
    %c0_i32_0 = arith.constant 0 : i32
    return %arg0, %c0_i32 : i32, i32
  }
  func.func @transform_1(%arg0: i32) -> (i32, i32) {
    %c0_i32 = arith.constant 0 : i32
    %c0_i32_0 = arith.constant 0 : i32
    %c0_i32_1 = arith.constant 0 : i32
    return %c0_i32, %c0_i32_0 : i32, i32
  }
  func.func @transform_2(%arg0: i32) -> (i32, i32) {
    %c0_i32 = arith.constant 0 : i32
    %c0_i32_0 = arith.constant 0 : i32
    %c0_i32_1 = arith.constant 0 : i32
    return %c0_i32, %c0_i32_0 : i32, i32
  }
  func.func @transform_3(%arg0: i32) -> (i32, i32) {
    %c0_i32 = arith.constant 0 : i32
    %c0_i32_0 = arith.constant 0 : i32
    %c0_i32_1 = arith.constant 0 : i32
    return %c0_i32, %c0_i32_0 : i32, i32
  }
  func.func @transform_4(%arg0: i32) -> (i32, i32) {
    %c0_i32 = arith.constant 0 : i32
    %c0_i32_0 = arith.constant 0 : i32
    return %arg0, %c0_i32 : i32, i32
  }
}

module attributes {stable_mosaic.version = 11 : i64} {
  func.func @encoder_kernel(%arg0: i32, %arg1: memref<8x128xf32, #tpu.memory_space<vmem>>, %arg2: memref<2x128xf32, #tpu.memory_space<vmem>>, %arg3: memref<128x128xf32, #tpu.memory_space<vmem>>, %arg4: memref<1x128xf32, #tpu.memory_space<vmem>>, %arg5: memref<8x128xf32, #tpu.memory_space<vmem>>) attributes {dimension_semantics = [#tpu.dimension_semantics<parallel>], iteration_bounds = array<i64: 1>, scalar_prefetch = 0 : i64, scratch_operands = 0 : i64, tpu.core_type = #tpu.core_type<tc>, window_params = [{transform_indices = @transform_0, window_bounds = array<i64: 8, 128>}, {pipeline_mode = #tpu.pipeline_mode<synchronous>, transform_indices = @transform_1, window_bounds = array<i64: 2, 128>}, {pipeline_mode = #tpu.pipeline_mode<synchronous>, transform_indices = @transform_2, window_bounds = array<i64: 128, 128>}, {pipeline_mode = #tpu.pipeline_mode<synchronous>, transform_indices = @transform_3, window_bounds = array<i64: 1, 128>}, {transform_indices = @transform_4, window_bounds = array<i64: 8, 128>}]} {
    %c0 = arith.constant 0 : index
    %c0_0 = arith.constant 0 : index
    %0 = vector.load %arg1[%c0, %c0_0] : memref<8x128xf32, #tpu.memory_space<vmem>>, vector<8x128xf32>
    %c8_i32 = arith.constant 8 : i32
    %1 = arith.muli %arg0, %c8_i32 : i32
    %2 = arith.sitofp %1 : i32 to f32
    %3 = tpu.iota {dimensions = array<i32: 0>} : vector<8x128xi32>
    %4 = arith.sitofp %3 : vector<8x128xi32> to vector<8x128xf32>
    %5 = vector.broadcast %2 : f32 to vector<8x128xf32>
    %6 = arith.addf %5, %4 : vector<8x128xf32>
    %c0_1 = arith.constant 0 : index
    %c0_2 = arith.constant 0 : index
    %7 = vector.load %arg2[%c0_1, %c0_2] : memref<2x128xf32, #tpu.memory_space<vmem>>, vector<1x128xf32>
    %8 = vector.broadcast %7 : vector<1x128xf32> to vector<8x128xf32>
    %9 = arith.mulf %6, %8 : vector<8x128xf32>
    %c1 = arith.constant 1 : index
    %c0_3 = arith.constant 0 : index
    %10 = vector.load %arg2[%c1, %c0_3] : memref<2x128xf32, #tpu.memory_space<vmem>>, vector<1x128xf32>
    %11 = vector.broadcast %10 : vector<1x128xf32> to vector<8x128xf32>
    %12 = arith.addf %9, %11 : vector<8x128xf32>
    %13 = math.sin %12 : vector<8x128xf32>
    %14 = arith.addf %0, %13 : vector<8x128xf32>
    %c0_4 = arith.constant 0 : index
    %c0_5 = arith.constant 0 : index
    %15 = vector.load %arg3[%c0_4, %c0_5] : memref<128x128xf32, #tpu.memory_space<vmem>>, vector<128x128xf32>
    %cst = arith.constant dense<0.000000e+00> : vector<8x128xf32>
    %16 = tpu.matmul %14, %15, %cst {dimension_numbers = #tpu.dot_dimension_numbers<[1], [0], [0], [1], [0, 0, 1, 1], [], []>} : vector<8x128xf32>, vector<128x128xf32>, vector<8x128xf32> -> vector<8x128xf32>
    %c0_6 = arith.constant 0 : index
    %c0_7 = arith.constant 0 : index
    %17 = vector.load %arg4[%c0_6, %c0_7] : memref<1x128xf32, #tpu.memory_space<vmem>>, vector<1x128xf32>
    %18 = vector.broadcast %17 : vector<1x128xf32> to vector<8x128xf32>
    %19 = arith.addf %16, %18 : vector<8x128xf32>
    %20 = tpu.iota {dimensions = array<i32: 1>} : vector<8x128xi32>
    %c16_i32 = arith.constant 16 : i32
    %21 = vector.broadcast %c16_i32 : i32 to vector<8x128xi32>
    %22 = arith.cmpi slt, %20, %21 : vector<8x128xi32>
    %cst_8 = arith.constant 0xFF800000 : f32
    %23 = vector.broadcast %cst_8 : f32 to vector<8x128xf32>
    %24 = arith.select %22, %19, %23 : vector<8x128xi1>, vector<8x128xf32>
    %cst_9 = arith.constant dense<0xFF800000> : vector<8xf32>
    %25 = vector.multi_reduction <maximumf>, %24, %cst_9 [1] : vector<8x128xf32> to vector<8xf32>
    %26 = vector.shape_cast %25 : vector<8xf32> to vector<8x1xf32>
    %27 = vector.broadcast %26 : vector<8x1xf32> to vector<8x128xf32>
    %28 = arith.subf %24, %27 : vector<8x128xf32>
    %29 = math.exp %28 : vector<8x128xf32>
    %cst_10 = arith.constant dense<0.000000e+00> : vector<8xf32>
    %30 = vector.multi_reduction <add>, %29, %cst_10 [1] : vector<8x128xf32> to vector<8xf32>
    %31 = vector.shape_cast %30 : vector<8xf32> to vector<8x1xf32>
    %32 = math.log %31 : vector<8x1xf32>
    %33 = vector.broadcast %32 : vector<8x1xf32> to vector<8x128xf32>
    %34 = arith.subf %28, %33 : vector<8x128xf32>
    %c0_11 = arith.constant 0 : index
    %c0_12 = arith.constant 0 : index
    %35 = vector.load %arg5[%c0_11, %c0_12] : memref<8x128xf32, #tpu.memory_space<vmem>>, vector<8x128xf32>
    tpu.vector_store %arg5[%c0_11, %c0_12], %34 {strides = array<i32>} : memref<8x128xf32, #tpu.memory_space<vmem>>, vector<8x128xf32>,
    return
  }
  func.func @transform_0(%arg0: i32) -> (i32, i32) {
    %c0_i32 = arith.constant 0 : i32
    %c0_i32_0 = arith.constant 0 : i32
    return %arg0, %c0_i32 : i32, i32
  }
  func.func @transform_1(%arg0: i32) -> (i32, i32) {
    %c0_i32 = arith.constant 0 : i32
    %c0_i32_0 = arith.constant 0 : i32
    %c0_i32_1 = arith.constant 0 : i32
    return %c0_i32, %c0_i32_0 : i32, i32
  }
  func.func @transform_2(%arg0: i32) -> (i32, i32) {
    %c0_i32 = arith.constant 0 : i32
    %c0_i32_0 = arith.constant 0 : i32
    %c0_i32_1 = arith.constant 0 : i32
    return %c0_i32, %c0_i32_0 : i32, i32
  }
  func.func @transform_3(%arg0: i32) -> (i32, i32) {
    %c0_i32 = arith.constant 0 : i32
    %c0_i32_0 = arith.constant 0 : i32
    %c0_i32_1 = arith.constant 0 : i32
    return %c0_i32, %c0_i32_0 : i32, i32
  }
  func.func @transform_4(%arg0: i32) -> (i32, i32) {
    %c0_i32 = arith.constant 0 : i32
    %c0_i32_0 = arith.constant 0 : i32
    return %arg0, %c0_i32 : i32, i32
  }
}

</mosaic_0001>

<bundles_post_ra>
// kernel: tpu_custom_call.1
= control target key start
LH: loop header
LB: loop body
LE: loop exit
PB: predicated region body
PF: predicated region fallthrough
CT: control target
= control target key end

     0   :  { %9 = vsyncpa [#allocation3], 0  ;;  %s596_s0 = inlined_call_operand.hbm [shape: f32[8,128], index: 0, kind: input, shape index: {}]   ;;  %s597_s1 = inlined_call_operand.vmem [shape: f32[2,128], index: 1, kind: input, shape index: {}]   ;;  %s598_s2 = inlined_call_operand.hbm [shape: f32[128,128], index: 2, kind: input, shape index: {}]   ;;  %s599_s3 = inlined_call_operand.vmem [shape: f32[1,128], index: 3, kind: input, shape index: {}]   ;;  %s600_s4 = inlined_call_operand.hbm [shape: f32[8,128], index: 4, kind: output, shape index: {}]  }
   0x1   :  { %10 = vsyncpa [#allocation6], 0 }
   0x2   :  { %11 = vsyncpa [#allocation4], 0  ;;  %s474_s15 = smov [#allocation2]   ;;  %s475_s17 = smov [#allocation5]  }
   0x3   :  { %s18_s16 = sshll.u32 %s474_s15, 4  ;;  %s29_s18 = sshll.u32 %s475_s17, 4  ;;  %s19_s16 = int_to_ptr.vmem [resolvable:$true] %s18_s16  ;;  %s513_s18 = int_to_ptr.vmem [resolvable:$true] %s29_s18 }
   0x4   :  { %s402_s21 = scalar_lea.hbm %s596_s0, 128 }
   0x5   :  { %p403_p0 = scmp.ne.s32.totalorder %s596_s0, %s402_s21  ;;  %p406_p1 = scmp.lt.u32.totalorder %s402_s21, %s596_s0 }
   0x7   :  { %p408_p2 = pnand %p406_p1, %p403_p0 }
   0x9   :  { %411 = shalt.err (!%p408_p2)
}
   0xa   :  { %s412_s26 = scalar_lea.vmem %s19_s16, 128  ;;  %p417_p4 = scmp.lt.s32.totalorder %s19_s16, %s19_s16 }
   0xb   :  { %p413_p3 = scmp.ne.s32.totalorder %s19_s16, %s412_s26  ;;  %p418_p5 = scmp.lt.s32.totalorder %s412_s26, %s412_s26 }
   0xd   :  { %p419_p6 = por %p418_p5, %p417_p4 }
   0xf   :  { %p420_p7 = pnand %p419_p6, %p413_p3 }
  0x11   :  { %423 = shalt.err (!%p420_p7)
}
  0x12   :  { %21 = dma.hbm_to_vmem [thread:$0]  %s596_s0, 128, %s19_s16, [#allocation3]  }
  0x13   :  { %s424_s5 = scalar_lea.hbm %s598_s2, 2048 }
  0x14   :  { %p425_p8 = scmp.ne.s32.totalorder %s598_s2, %s424_s5  ;;  %p428_p9 = scmp.lt.u32.totalorder %s424_s5, %s598_s2 }
  0x16   :  { %p430_p10 = pnand %p428_p9, %p425_p8 }
  0x18   :  { %433 = shalt.err (!%p430_p10)
}
  0x19   :  { %s434_s10 = scalar_lea.vmem %s513_s18, 2048  ;;  %p439_p12 = scmp.lt.s32.totalorder %s513_s18, %s513_s18 }
  0x1a   :  { %p435_p11 = scmp.ne.s32.totalorder %s513_s18, %s434_s10  ;;  %p440_p13 = scmp.lt.s32.totalorder %s434_s10, %s434_s10 }
  0x1c   :  { %p441_p0 = por %p440_p13, %p439_p12 }
  0x1e   :  { %p442_p1 = pnand %p441_p0, %p435_p11 }
  0x20   :  { %445 = shalt.err (!%p442_p1)
}
  0x21   :  { %s476_s0 = smov 128   ;;  %s477_s11 = smov 8  }
  0x22   :  { %35 = dma.hbm_to_vmem [thread:$0]  %s598_s2, 2048, %s513_s18, [#allocation6], %s476_s0, %s476_s0, %s477_s11  }
  0x23   :  { %468 = dma.done.wait [#allocation3], 128  }
  0x24   :  { %469 = vsyncadd [#allocation3], 4294967168 }
  0x25   :  { %470 = dma.done.wait [#allocation6], 2048  }
  0x26   :  { %471 = vsyncadd [#allocation6], 4294965248  ;;  %v478_v0 = vmov 0.0|0.0   ;;  %vm479_vm0 = vmmov 0   ;;  %v480_v1 = vmov 0.0   ;;  %v47_v2 = vlaneseq  ;;  %v169_v4 = vld [vmem:[#allocation5] sm:$0xff] }
  0x27   :  { %352 = vmatprep.subr.bf16.mxu0 %v478_v0  ;;  %349 = vmatprep.mubr.msk.f32.mxu0 %vm479_vm0, %v480_v1  ;;  %v170_v5 = vld [vmem:[#allocation5 + $0x8] sm:$0xff]  ;;  %v171_v6 = vld [vmem:[#allocation5 + $0x10] sm:$0xff]  ;;  %v172_v8 = vld [vmem:[#allocation5 + $0x18] sm:$0xff]  ;;  %v481_v42 = vmov 683565275   ;;  %s487_s18 = smov [#allocation7]  }
  0x28   :  { %v48_v3 = vshrl.u32 %v47_v2, 7  ;;  %v353_v7 = vpack.c.bf16 %v170_v5, %v169_v4  ;;  %v356_v10 = vpack.c.bf16 %v172_v8, %v171_v6  ;;  %v173_v11 = vld [vmem:[#allocation5 + $0x20] sm:$0xff]  ;;  %v174_v12 = vld [vmem:[#allocation5 + $0x28] sm:$0xff]  ;;  %v293_v13 = vld [vmem:[%s597_s1] ss:$0 sm:$0xff]  ;;  %s283_s19 = sshll.u32 %s487_s18, 4  ;;  %s284_s19 = int_to_ptr.vmem [resolvable:$true] %s283_s19 }
  0x29   :  { %v294_v15 = vld [vmem:[%s597_s1 + $0x1] ss:$0 sm:$0xff]  ;;  %v359_v16 = vpack.c.bf16 %v174_v12, %v173_v11  ;;  %v175_v17 = vld [vmem:[#allocation5 + $0x30] sm:$0xff]  ;;  %v177_v22 = vld [vmem:[#allocation5 + $0x40] sm:$0xff]  ;;  %v482_v44 = vmov 2475754826   ;;  %p451_p3 = scmp.lt.s32.totalorder %s284_s19, %s284_s19 }
  0x2a   :  { %v49_v9 = vcvt.s32.f32 %v48_v3  ;;  %354 = vmatpush3.bf16.msra.mxu0 %v353_v7  ;;  %v176_v18 = vld [vmem:[#allocation5 + $0x38] sm:$0xff]  ;;  %v178_v23 = vld [vmem:[#allocation5 + $0x48] sm:$0xff]  ;;  %v179_v28 = vld [vmem:[#allocation5 + $0x50] sm:$0xff]  ;;  %v483_v46 = vmov 2131351028  }
  0x2b   :  { %355 = vmatprep.subr.bf16.mxu0 %v478_v0  ;;  %v362_v21 = vpack.c.bf16 %v176_v18, %v175_v17  ;;  %v365_v27 = vpack.c.bf16 %v178_v23, %v177_v22  ;;  %v180_v29 = vld [vmem:[#allocation5 + $0x58] sm:$0xff]  ;;  %v181_v33 = vld [vmem:[#allocation5 + $0x60] sm:$0xff]  ;;  %v182_v35 = vld [vmem:[#allocation5 + $0x68] sm:$0xff]  ;;  %v484_v50 = vmov 2102212464  }
  0x2c   :  { %v57_v14 = vmul.f32 %v293_v13, %v49_v9  ;;  %v368_v32 = vpack.c.bf16 %v180_v29, %v179_v28  ;;  %v183_v36 = vld [vmem:[#allocation5 + $0x70] sm:$0xff]  ;;  %v184_v37 = vld [vmem:[#allocation5 + $0x78] sm:$0xff]  ;;  %v371_v48 = vpack.c.bf16 %v182_v35, %v181_v33  ;;  %v485_v52 = vmov 920167782  }
  0x2d   :  { %v374_v49 = vpack.c.bf16 %v184_v37, %v183_v36  ;;  %v486_v59 = vmov 1326507024  }
  0x2e   :  { %357 = vmatpush3.bf16.msra.mxu0 %v356_v10  ;;  %v554_v19 = vadd.f32 %v294_v15, %v57_v14 }
  0x2f   :  { %358 = vmatprep.subr.bf16.mxu0 %v478_v0 }
  0x30   :  { %v67_v20 = vand.u32 2139095040, %v554_v19  ;;  %v64_v25 = vand.u32 2147483647, %v554_v19  ;;  %vm66_vm8 = vcmp.lt.s32.totalorder %v554_v19, 0  ;;  %vm156_vm13 = vweird.f32 %v554_v19 }
  0x32   :  { %360 = vmatpush3.bf16.msra.mxu0 %v359_v16  ;;  %v68_v24 = vshrl.u32 %v67_v20, 23  ;;  %v71_v31 = vand.u32 8388607, %v64_v25  ;;  %vm65_vm9 = vcmp.le.f32.partialorder %v64_v25, 0.7853982 }
  0x33   :  { %361 = vmatprep.subr.bf16.mxu0 %v478_v0 }
  0x34   :  { %v295_v26 = vadd.s32 4294967169, %v68_v24  ;;  %v72_v39 = vor.u32 8388608, %v71_v31 }
  0x36   :  { %363 = vmatpush3.bf16.msra.mxu0 %v362_v21  ;;  %v74_v30 = vadd.s32 1, %v295_v26  ;;  %v112_v61 = vshll.u32 %v72_v39, 8 }
  0x37   :  { %364 = vmatprep.subr.bf16.mxu0 %v478_v0 }
  0x38   :  { %vm75_vm1 = vcmp.gt.s32.totalorder %v74_v30, 0 }
  0x39   :  { %v76_v34 = vsel %vm75_vm1, %v74_v30, 0 }
  0x3a   :  { %366 = vmatpush3.bf16.msra.mxu0 %v365_v27  ;;  %v78_v38 = vand.u32 31, %v76_v34  ;;  %v77_v40 = vshrl.u32 %v76_v34, 5 }
  0x3b   :  { %367 = vmatprep.subr.bf16.mxu0 %v478_v0 }
  0x3c   :  { %v79_v41 = vsub.s32 32, %v78_v38  ;;  %v81_v43 = vshll.u32 %v481_v42, %v78_v38  ;;  %v84_v45 = vshll.u32 %v482_v44, %v78_v38  ;;  %v87_v47 = vshll.u32 %v483_v46, %v78_v38 }
  0x3d   :  { %v90_v51 = vshll.u32 %v484_v50, %v78_v38  ;;  %v93_v53 = vshll.u32 %v485_v52, %v78_v38  ;;  %vm96_vm2 = vcmp.lt.s32.totalorder %v77_v40, 1  ;;  %vm99_vm3 = vcmp.lt.s32.totalorder %v77_v40, 4 }
  0x3e   :  { %369 = vmatpush3.bf16.msra.mxu0 %v368_v32  ;;  %v80_v54 = vshrl.u32 %v481_v42, %v79_v41  ;;  %v82_v55 = vshrl.u32 %v482_v44, %v79_v41  ;;  %v85_v56 = vshrl.u32 %v483_v46, %v79_v41  ;;  %v88_v57 = vshrl.u32 %v484_v50, %v79_v41 }
  0x3f   :  { %370 = vmatprep.subr.bf16.mxu0 %v478_v0  ;;  %v91_v58 = vshrl.u32 %v485_v52, %v79_v41  ;;  %v94_v60 = vshrl.u32 %v486_v59, %v79_v41  ;;  %vm97_vm4 = vcmp.lt.s32.totalorder %v77_v40, 2  ;;  %vm98_vm5 = vcmp.lt.s32.totalorder %v77_v40, 3  ;;  %v44_v59 = vld [vmem:[#allocation2] sm:$0xff] }
  0x40   :  { %v83_v62 = vor.u32 %v82_v55, %v81_v43  ;;  %v86_v63 = vor.u32 %v85_v56, %v84_v45  ;;  %v89_v1 = vor.u32 %v88_v57, %v87_v47 }
  0x41   :  { %v92_v3 = vor.u32 %v91_v58, %v90_v51  ;;  %v95_v4 = vor.u32 %v94_v60, %v93_v53 }
  0x42   :  { %372 = vmatpush3.bf16.msra.mxu0 %v371_v48  ;;  %v100_v5 = vsel %vm96_vm2, %v80_v54, %v83_v62  ;;  %v101_v6 = vsel %vm99_vm3, %v89_v1, 2102212464  ;;  %v104_v7 = vsel %vm96_vm2, %v83_v62, %v86_v63  ;;  %v108_v8 = vsel %vm96_vm2, %v86_v63, %v89_v1 }
  0x43   :  { %373 = vmatprep.subr.bf16.mxu0 %v478_v0  ;;  %v102_v9 = vsel %vm98_vm5, %v86_v63, %v101_v6  ;;  %v105_v10 = vsel %vm99_vm3, %v92_v3, 920167782  ;;  %v109_v11 = vsel %vm99_vm3, %v95_v4, 1326507024 }
  0x44   :  { %v106_v12 = vsel %vm98_vm5, %v89_v1, %v105_v10  ;;  %v110_v13 = vsel %vm98_vm5, %v92_v3, %v109_v11  ;;  %v103_v14 = vsel %vm97_vm4, %v100_v5, %v102_v9  ;;  %v263_v1 = vand.u32 127, %v47_v2  ;;  %v299_v3 = vld [vmem:[%s599_s3] ss:$0 sm:$0xff]  ;;  %s446_s3 = scalar_lea.vmem %s284_s19, 128 }
  0x45   :  { %v107_v15 = vsel %vm97_vm4, %v104_v7, %v106_v12  ;;  %v111_v16 = vsel %vm97_vm4, %v108_v8, %v110_v13  ;;  %v119_v0 = vmul.u32 %v112_v61, %v103_v14  ;;  %p447_p2 = scmp.ne.s32.totalorder %s284_s19, %s446_s3  ;;  %p452_p4 = scmp.lt.s32.totalorder %s446_s3, %s446_s3 }
  0x46   :  { %375 = vmatpush3.bf16.msra.mxu0 %v374_v49  ;;  %v565_v17 = vmul.u32.u64.low %v112_v61, %v111_v16  ;;  %v566_v18 = vmul.u32.u64.high %v112_v61, %v111_v16, %v565_v17  ;;  %v568_v20 = vmul.u32.u64.low %v112_v61, %v107_v15  ;;  %v569_v21 = vmul.u32.u64.high %v112_v61, %v107_v15, %v568_v20 }
  0x47   :  { %vm264_vm14 = vcmp.lt.s32.totalorder %v263_v1, 16  ;;  %p453_p5 = por %p452_p4, %p451_p3 }
  0x48   :  { %vm121_vm6 = vc.u32 %v566_v18, %v568_v20  ;;  %v122_v22 = vadd.s32 1, %v569_v21  ;;  %v120_v34 = vadd.s32 %v568_v20, %v566_v18 }
  0x49   :  { %p454_p6 = pnand %p453_p5, %p447_p2 }
  0x4a   :  { %v123_v23 = vsel %vm121_vm6, %v122_v22, %v569_v21 }
  0x4b   :  { %v124_v24 = vadd.s32 %v123_v23, %v119_v0 }
  0x4d   :  { %v125_v26 = vadd.s32 536870912, %v124_v24 }
  0x4f   :  { %v126_v27 = vshrl.u32 %v125_v26, 30 }
  0x51   :  { %v127_v28 = vshll.u32 %v126_v27, 30  ;;  %v150_v46 = vsub.s32 4, %v126_v27 }
  0x53   :  { %v128_v29 = vsub.s32 %v124_v24, %v127_v28  ;;  %v151_v49 = vsel %vm66_vm8, %v150_v46, %v126_v27 }
  0x54   :  { %v153_v52 = vsel %vm65_vm9, 0, %v151_v49 }
  0x55   :  { %v130_v30 = vsub.s32 0, %v128_v29  ;;  %v157_v53 = vadd.s32 3, %v153_v52 }
  0x57   :  { %v296_v31 = vmin.u32 %v130_v30, %v128_v29  ;;  %v158_v54 = vand.u32 3, %v157_v53 }
  0x59   :  { %v132_v32 = vclz %v296_v31  ;;  %vm163_vm10 = vcmp.eq.s32.totalorder %v158_v54, 2  ;;  %vm160_vm11 = vcmp.eq.s32.totalorder %v158_v54, 0  ;;  %vm159_vm12 = vcmp.lt.s32.totalorder %v158_v54, 2 }
  0x5b   :  { %v297_v33 = vadd.s32 4294967294, %v132_v32 }
  0x5d   :  { %vm298_vm7 = vcmp.lt.s32.totalorder %v297_v33, 0 }
  0x5e   :  { %v135_v35 = vsel %vm298_vm7, 0, %v297_v33 }
  0x5f   :  { %v136_v36 = vsub.s32 32, %v135_v35  ;;  %v137_v37 = vshll.u32 %v128_v29, %v135_v35  ;;  %v140_v38 = vsub.s32 4294967266, %v135_v35 }
  0x61   :  { %v138_v39 = vshrl.u32 %v120_v34, %v136_v36  ;;  %v141_v40 = vadd.s32 127, %v140_v38 }
  0x63   :  { %v139_v41 = vor.u32 %v138_v39, %v137_v37  ;;  %v142_v42 = vshll.u32 %v141_v40, 23 }
  0x65   :  { %v143_v43 = vor.u32 4788187, %v142_v42  ;;  %v146_v44 = vcvt.s32.f32 %v139_v41 }
  0x67   :  { %v144_v45 = vand.u32 2147483647, %v143_v43 }
  0x69   :  { %v147_v47 = vmul.f32 %v146_v44, %v144_v45 }
  0x6b   :  { %v148_v48 = vxor.u32 2147483648, %v147_v47 }
  0x6d   :  { %v149_v50 = vsel %vm66_vm8, %v148_v48, %v147_v47 }
  0x6e   :  { %v152_v51 = vsel %vm65_vm9, %v554_v19, %v149_v50 }
  0x6f   :  { %394 = vcosq.f32 %v152_v51 }
  0x70   :  { %396 = vsinq.f32 %v152_v51 }
  0x79   :  { %v395_v55 = vpop.eup %394 }
  0x7a   :  { %v397_v56 = vpop.eup %396  ;;  %v164_v57 = vxor.u32 2147483648, %v395_v55 }
  0x7b   :  { %v161_v58 = vxor.u32 2147483648, %v397_v56 }
  0x7c   :  { %v165_v25 = vsel %vm163_vm10, %v164_v57, %v397_v56 }
  0x7d   :  { %v162_v60 = vsel %vm160_vm11, %v395_v55, %v161_v58 }
  0x7e   :  { %v166_v61 = vsel %vm159_vm12, %v162_v60, %v165_v25 }
  0x7f   :  { %v167_v62 = vsel %vm156_vm13, nan, %v166_v61 }
  0x80   :  { %v168_v63 = vadd.f32 %v167_v62, %v44_v59 }
  0x82   :  { %350 = vmatmul.mubr.f32.vlgmr.msra.gmra.mrb[0].mxu0 %v168_v63 }
 0x155   :  { %v258_v4 = vpop.f32.mrb[0].mxu0 }
 0x156   :  { %v259_v5 = vadd.f32 %v299_v3, %v258_v4  ;;  %v351_v6 = vpop.f32.mrb[1].mxu0 }
 0x158   :  { %v265_v7 = vsel %vm264_vm14, %v259_v5, -inf }
 0x159   :  { %266 = vmax.xlane.f32.xlu0 %v265_v7 }
 0x1e6   :  { %v267_v19 = vpop.xlane.xlu0 %266 }
 0x1e7   :  { %v268_v8 = vsub.f32 %v265_v7, %v267_v19 }
 0x1e9   :  { %v269_v9 = vmul.f32 1.442695, %v268_v8 }
 0x1eb   :  { %398 = vpow2.f32 %v269_v9 }
 0x1f5   :  { %v399_v10 = vpop.eup %398 }
 0x1f6   :  { %271 = vadd.xlane.f32.xlu0 %v399_v10 }
 0x283   :  { %v272_v11 = vpop.xlane.xlu0 %271 }
 0x284   :  { %400 = vlog2.f32 %v272_v11 }
 0x28e   :  { %v401_v12 = vpop.eup %400 }
 0x28f   :  { %v274_v2 = vmul.f32 0.6931472, %v401_v12 }
 0x291   :  { %v275_v13 = vsub.f32 %v268_v8, %v274_v2 }
 0x293   :  { %276 = vst [vmem:[#allocation7] sm:$0xff] %v275_v13 }
 0x294   :  { %457 = shalt.err (!%p454_p6)
}
 0x295   :  { %s458_s22 = scalar_lea.hbm %s600_s4, 128 }
 0x296   :  { %p459_p7 = scmp.ne.s32.totalorder %s600_s4, %s458_s22  ;;  %p462_p8 = scmp.lt.u32.totalorder %s458_s22, %s600_s4 }
 0x298   :  { %p464_p9 = pnand %p462_p8, %p459_p7 }
 0x29a   :  { %467 = shalt.err (!%p464_p9)
}
 0x29b   :  { %286 = dma.vmem_to_hbm [thread:$0]  %s284_s19, 128, %s600_s4, [#allocation4]  }
 0x29c   :  { %472 = dma.done.wait [#allocation4], 128  }
 0x29d   :  { %473 = vsyncadd [#allocation4], 4294967168 }
 0x29e   :  { %290 = vsyncpa [#allocation3], 1 }
 0x29f   :  { %291 = vsyncpa [#allocation6], 1 }
 0x2a0   :  { %292 = vsyncpa [#allocation4], 1 }

// kernel: tpu_custom_call.1
= control target key start
LH: loop header
LB: loop body
LE: loop exit
PB: predicated region body
PF: predicated region fallthrough
CT: control target
= control target key end

     0   :  { %9 = vsyncpa [#allocation3], 0  ;;  %s596_s0 = inlined_call_operand.hbm [shape: f32[8,128], index: 0, kind: input, shape index: {}]   ;;  %s597_s1 = inlined_call_operand.vmem [shape: f32[2,128], index: 1, kind: input, shape index: {}]   ;;  %s598_s2 = inlined_call_operand.hbm [shape: f32[128,128], index: 2, kind: input, shape index: {}]   ;;  %s599_s3 = inlined_call_operand.vmem [shape: f32[1,128], index: 3, kind: input, shape index: {}]   ;;  %s600_s4 = inlined_call_operand.hbm [shape: f32[8,128], index: 4, kind: output, shape index: {}]  }
   0x1   :  { %10 = vsyncpa [#allocation6], 0 }
   0x2   :  { %11 = vsyncpa [#allocation4], 0  ;;  %s474_s15 = smov [#allocation2]   ;;  %s475_s17 = smov [#allocation5]  }
   0x3   :  { %s18_s16 = sshll.u32 %s474_s15, 4  ;;  %s29_s18 = sshll.u32 %s475_s17, 4  ;;  %s19_s16 = int_to_ptr.vmem [resolvable:$true] %s18_s16  ;;  %s513_s18 = int_to_ptr.vmem [resolvable:$true] %s29_s18 }
   0x4   :  { %s402_s21 = scalar_lea.hbm %s596_s0, 128 }
   0x5   :  { %p403_p0 = scmp.ne.s32.totalorder %s596_s0, %s402_s21  ;;  %p406_p1 = scmp.lt.u32.totalorder %s402_s21, %s596_s0 }
   0x7   :  { %p408_p2 = pnand %p406_p1, %p403_p0 }
   0x9   :  { %411 = shalt.err (!%p408_p2)
}
   0xa   :  { %s412_s26 = scalar_lea.vmem %s19_s16, 128  ;;  %p417_p4 = scmp.lt.s32.totalorder %s19_s16, %s19_s16 }
   0xb   :  { %p413_p3 = scmp.ne.s32.totalorder %s19_s16, %s412_s26  ;;  %p418_p5 = scmp.lt.s32.totalorder %s412_s26, %s412_s26 }
   0xd   :  { %p419_p6 = por %p418_p5, %p417_p4 }
   0xf   :  { %p420_p7 = pnand %p419_p6, %p413_p3 }
  0x11   :  { %423 = shalt.err (!%p420_p7)
}
  0x12   :  { %21 = dma.hbm_to_vmem [thread:$0]  %s596_s0, 128, %s19_s16, [#allocation3]  }
  0x13   :  { %s424_s5 = scalar_lea.hbm %s598_s2, 2048 }
  0x14   :  { %p425_p8 = scmp.ne.s32.totalorder %s598_s2, %s424_s5  ;;  %p428_p9 = scmp.lt.u32.totalorder %s424_s5, %s598_s2 }
  0x16   :  { %p430_p10 = pnand %p428_p9, %p425_p8 }
  0x18   :  { %433 = shalt.err (!%p430_p10)
}
  0x19   :  { %s434_s10 = scalar_lea.vmem %s513_s18, 2048  ;;  %p439_p12 = scmp.lt.s32.totalorder %s513_s18, %s513_s18 }
  0x1a   :  { %p435_p11 = scmp.ne.s32.totalorder %s513_s18, %s434_s10  ;;  %p440_p13 = scmp.lt.s32.totalorder %s434_s10, %s434_s10 }
  0x1c   :  { %p441_p0 = por %p440_p13, %p439_p12 }
  0x1e   :  { %p442_p1 = pnand %p441_p0, %p435_p11 }
  0x20   :  { %445 = shalt.err (!%p442_p1)
}
  0x21   :  { %s476_s0 = smov 128   ;;  %s477_s11 = smov 8  }
  0x22   :  { %35 = dma.hbm_to_vmem [thread:$0]  %s598_s2, 2048, %s513_s18, [#allocation6], %s476_s0, %s476_s0, %s477_s11  }
  0x23   :  { %468 = dma.done.wait [#allocation3], 128  }
  0x24   :  { %469 = vsyncadd [#allocation3], 4294967168 }
  0x25   :  { %470 = dma.done.wait [#allocation6], 2048  }
  0x26   :  { %471 = vsyncadd [#allocation6], 4294965248  ;;  %v478_v0 = vmov 0.0|0.0   ;;  %vm479_vm0 = vmmov 0   ;;  %v480_v1 = vmov 0.0   ;;  %v47_v2 = vlaneseq  ;;  %v169_v4 = vld [vmem:[#allocation5] sm:$0xff] }
  0x27   :  { %352 = vmatprep.subr.bf16.mxu0 %v478_v0  ;;  %349 = vmatprep.mubr.msk.f32.mxu0 %vm479_vm0, %v480_v1  ;;  %v170_v5 = vld [vmem:[#allocation5 + $0x8] sm:$0xff]  ;;  %v171_v6 = vld [vmem:[#allocation5 + $0x10] sm:$0xff]  ;;  %v172_v8 = vld [vmem:[#allocation5 + $0x18] sm:$0xff]  ;;  %v481_v42 = vmov 683565275   ;;  %s487_s18 = smov [#allocation7]  }
  0x28   :  { %v48_v3 = vshrl.u32 %v47_v2, 7  ;;  %v353_v7 = vpack.c.bf16 %v170_v5, %v169_v4  ;;  %v356_v10 = vpack.c.bf16 %v172_v8, %v171_v6  ;;  %v173_v11 = vld [vmem:[#allocation5 + $0x20] sm:$0xff]  ;;  %v174_v12 = vld [vmem:[#allocation5 + $0x28] sm:$0xff]  ;;  %v293_v13 = vld [vmem:[%s597_s1] ss:$0 sm:$0xff]  ;;  %s283_s19 = sshll.u32 %s487_s18, 4  ;;  %s284_s19 = int_to_ptr.vmem [resolvable:$true] %s283_s19 }
  0x29   :  { %v294_v15 = vld [vmem:[%s597_s1 + $0x1] ss:$0 sm:$0xff]  ;;  %v359_v16 = vpack.c.bf16 %v174_v12, %v173_v11  ;;  %v175_v17 = vld [vmem:[#allocation5 + $0x30] sm:$0xff]  ;;  %v177_v22 = vld [vmem:[#allocation5 + $0x40] sm:$0xff]  ;;  %v482_v44 = vmov 2475754826   ;;  %p451_p3 = scmp.lt.s32.totalorder %s284_s19, %s284_s19 }
  0x2a   :  { %v49_v9 = vcvt.s32.f32 %v48_v3  ;;  %354 = vmatpush3.bf16.msra.mxu0 %v353_v7  ;;  %v176_v18 = vld [vmem:[#allocation5 + $0x38] sm:$0xff]  ;;  %v178_v23 = vld [vmem:[#allocation5 + $0x48] sm:$0xff]  ;;  %v179_v28 = vld [vmem:[#allocation5 + $0x50] sm:$0xff]  ;;  %v483_v46 = vmov 2131351028  }
  0x2b   :  { %355 = vmatprep.subr.bf16.mxu0 %v478_v0  ;;  %v362_v21 = vpack.c.bf16 %v176_v18, %v175_v17  ;;  %v365_v27 = vpack.c.bf16 %v178_v23, %v177_v22  ;;  %v180_v29 = vld [vmem:[#allocation5 + $0x58] sm:$0xff]  ;;  %v181_v33 = vld [vmem:[#allocation5 + $0x60] sm:$0xff]  ;;  %v182_v35 = vld [vmem:[#allocation5 + $0x68] sm:$0xff]  ;;  %v484_v50 = vmov 2102212464  }
  0x2c   :  { %v57_v14 = vmul.f32 %v293_v13, %v49_v9  ;;  %v368_v32 = vpack.c.bf16 %v180_v29, %v179_v28  ;;  %v183_v36 = vld [vmem:[#allocation5 + $0x70] sm:$0xff]  ;;  %v184_v37 = vld [vmem:[#allocation5 + $0x78] sm:$0xff]  ;;  %v371_v48 = vpack.c.bf16 %v182_v35, %v181_v33  ;;  %v485_v52 = vmov 920167782  }
  0x2d   :  { %v374_v49 = vpack.c.bf16 %v184_v37, %v183_v36  ;;  %v486_v59 = vmov 1326507024  }
  0x2e   :  { %357 = vmatpush3.bf16.msra.mxu0 %v356_v10  ;;  %v554_v19 = vadd.f32 %v294_v15, %v57_v14 }
  0x2f   :  { %358 = vmatprep.subr.bf16.mxu0 %v478_v0 }
  0x30   :  { %v67_v20 = vand.u32 2139095040, %v554_v19  ;;  %v64_v25 = vand.u32 2147483647, %v554_v19  ;;  %vm66_vm8 = vcmp.lt.s32.totalorder %v554_v19, 0  ;;  %vm156_vm13 = vweird.f32 %v554_v19 }
  0x32   :  { %360 = vmatpush3.bf16.msra.mxu0 %v359_v16  ;;  %v68_v24 = vshrl.u32 %v67_v20, 23  ;;  %v71_v31 = vand.u32 8388607, %v64_v25  ;;  %vm65_vm9 = vcmp.le.f32.partialorder %v64_v25, 0.7853982 }
  0x33   :  { %361 = vmatprep.subr.bf16.mxu0 %v478_v0 }
  0x34   :  { %v295_v26 = vadd.s32 4294967169, %v68_v24  ;;  %v72_v39 = vor.u32 8388608, %v71_v31 }
  0x36   :  { %363 = vmatpush3.bf16.msra.mxu0 %v362_v21  ;;  %v74_v30 = vadd.s32 1, %v295_v26  ;;  %v112_v61 = vshll.u32 %v72_v39, 8 }
  0x37   :  { %364 = vmatprep.subr.bf16.mxu0 %v478_v0 }
  0x38   :  { %vm75_vm1 = vcmp.gt.s32.totalorder %v74_v30, 0 }
  0x39   :  { %v76_v34 = vsel %vm75_vm1, %v74_v30, 0 }
  0x3a   :  { %366 = vmatpush3.bf16.msra.mxu0 %v365_v27  ;;  %v78_v38 = vand.u32 31, %v76_v34  ;;  %v77_v40 = vshrl.u32 %v76_v34, 5 }
  0x3b   :  { %367 = vmatprep.subr.bf16.mxu0 %v478_v0 }
  0x3c   :  { %v79_v41 = vsub.s32 32, %v78_v38  ;;  %v81_v43 = vshll.u32 %v481_v42, %v78_v38  ;;  %v84_v45 = vshll.u32 %v482_v44, %v78_v38  ;;  %v87_v47 = vshll.u32 %v483_v46, %v78_v38 }
  0x3d   :  { %v90_v51 = vshll.u32 %v484_v50, %v78_v38  ;;  %v93_v53 = vshll.u32 %v485_v52, %v78_v38  ;;  %vm96_vm2 = vcmp.lt.s32.totalorder %v77_v40, 1  ;;  %vm99_vm3 = vcmp.lt.s32.totalorder %v77_v40, 4 }
  0x3e   :  { %369 = vmatpush3.bf16.msra.mxu0 %v368_v32  ;;  %v80_v54 = vshrl.u32 %v481_v42, %v79_v41  ;;  %v82_v55 = vshrl.u32 %v482_v44, %v79_v41  ;;  %v85_v56 = vshrl.u32 %v483_v46, %v79_v41  ;;  %v88_v57 = vshrl.u32 %v484_v50, %v79_v41 }
  0x3f   :  { %370 = vmatprep.subr.bf16.mxu0 %v478_v0  ;;  %v91_v58 = vshrl.u32 %v485_v52, %v79_v41  ;;  %v94_v60 = vshrl.u32 %v486_v59, %v79_v41  ;;  %vm97_vm4 = vcmp.lt.s32.totalorder %v77_v40, 2  ;;  %vm98_vm5 = vcmp.lt.s32.totalorder %v77_v40, 3  ;;  %v44_v59 = vld [vmem:[#allocation2] sm:$0xff] }
  0x40   :  { %v83_v62 = vor.u32 %v82_v55, %v81_v43  ;;  %v86_v63 = vor.u32 %v85_v56, %v84_v45  ;;  %v89_v1 = vor.u32 %v88_v57, %v87_v47 }
  0x41   :  { %v92_v3 = vor.u32 %v91_v58, %v90_v51  ;;  %v95_v4 = vor.u32 %v94_v60, %v93_v53 }
  0x42   :  { %372 = vmatpush3.bf16.msra.mxu0 %v371_v48  ;;  %v100_v5 = vsel %vm96_vm2, %v80_v54, %v83_v62  ;;  %v101_v6 = vsel %vm99_vm3, %v89_v1, 2102212464  ;;  %v104_v7 = vsel %vm96_vm2, %v83_v62, %v86_v63  ;;  %v108_v8 = vsel %vm96_vm2, %v86_v63, %v89_v1 }
  0x43   :  { %373 = vmatprep.subr.bf16.mxu0 %v478_v0  ;;  %v102_v9 = vsel %vm98_vm5, %v86_v63, %v101_v6  ;;  %v105_v10 = vsel %vm99_vm3, %v92_v3, 920167782  ;;  %v109_v11 = vsel %vm99_vm3, %v95_v4, 1326507024 }
  0x44   :  { %v106_v12 = vsel %vm98_vm5, %v89_v1, %v105_v10  ;;  %v110_v13 = vsel %vm98_vm5, %v92_v3, %v109_v11  ;;  %v103_v14 = vsel %vm97_vm4, %v100_v5, %v102_v9  ;;  %v263_v1 = vand.u32 127, %v47_v2  ;;  %v299_v3 = vld [vmem:[%s599_s3] ss:$0 sm:$0xff]  ;;  %s446_s3 = scalar_lea.vmem %s284_s19, 128 }
  0x45   :  { %v107_v15 = vsel %vm97_vm4, %v104_v7, %v106_v12  ;;  %v111_v16 = vsel %vm97_vm4, %v108_v8, %v110_v13  ;;  %v119_v0 = vmul.u32 %v112_v61, %v103_v14  ;;  %p447_p2 = scmp.ne.s32.totalorder %s284_s19, %s446_s3  ;;  %p452_p4 = scmp.lt.s32.totalorder %s446_s3, %s446_s3 }
  0x46   :  { %375 = vmatpush3.bf16.msra.mxu0 %v374_v49  ;;  %v565_v17 = vmul.u32.u64.low %v112_v61, %v111_v16  ;;  %v566_v18 = vmul.u32.u64.high %v112_v61, %v111_v16, %v565_v17  ;;  %v568_v20 = vmul.u32.u64.low %v112_v61, %v107_v15  ;;  %v569_v21 = vmul.u32.u64.high %v112_v61, %v107_v15, %v568_v20 }
  0x47   :  { %vm264_vm14 = vcmp.lt.s32.totalorder %v263_v1, 16  ;;  %p453_p5 = por %p452_p4, %p451_p3 }
  0x48   :  { %vm121_vm6 = vc.u32 %v566_v18, %v568_v20  ;;  %v122_v22 = vadd.s32 1, %v569_v21  ;;  %v120_v34 = vadd.s32 %v568_v20, %v566_v18 }
  0x49   :  { %p454_p6 = pnand %p453_p5, %p447_p2 }
  0x4a   :  { %v123_v23 = vsel %vm121_vm6, %v122_v22, %v569_v21 }
  0x4b   :  { %v124_v24 = vadd.s32 %v123_v23, %v119_v0 }
  0x4d   :  { %v125_v26 = vadd.s32 536870912, %v124_v24 }
  0x4f   :  { %v126_v27 = vshrl.u32 %v125_v26, 30 }
  0x51   :  { %v127_v28 = vshll.u32 %v126_v27, 30  ;;  %v150_v46 = vsub.s32 4, %v126_v27 }
  0x53   :  { %v128_v29 = vsub.s32 %v124_v24, %v127_v28  ;;  %v151_v49 = vsel %vm66_vm8, %v150_v46, %v126_v27 }
  0x54   :  { %v153_v52 = vsel %vm65_vm9, 0, %v151_v49 }
  0x55   :  { %v130_v30 = vsub.s32 0, %v128_v29  ;;  %v157_v53 = vadd.s32 3, %v153_v52 }
  0x57   :  { %v296_v31 = vmin.u32 %v130_v30, %v128_v29  ;;  %v158_v54 = vand.u32 3, %v157_v53 }
  0x59   :  { %v132_v32 = vclz %v296_v31  ;;  %vm163_vm10 = vcmp.eq.s32.totalorder %v158_v54, 2  ;;  %vm160_vm11 = vcmp.eq.s32.totalorder %v158_v54, 0  ;;  %vm159_vm12 = vcmp.lt.s32.totalorder %v158_v54, 2 }
  0x5b   :  { %v297_v33 = vadd.s32 4294967294, %v132_v32 }
  0x5d   :  { %vm298_vm7 = vcmp.lt.s32.totalorder %v297_v33, 0 }
  0x5e   :  { %v135_v35 = vsel %vm298_vm7, 0, %v297_v33 }
  0x5f   :  { %v136_v36 = vsub.s32 32, %v135_v35  ;;  %v137_v37 = vshll.u32 %v128_v29, %v135_v35  ;;  %v140_v38 = vsub.s32 4294967266, %v135_v35 }
  0x61   :  { %v138_v39 = vshrl.u32 %v120_v34, %v136_v36  ;;  %v141_v40 = vadd.s32 127, %v140_v38 }
  0x63   :  { %v139_v41 = vor.u32 %v138_v39, %v137_v37  ;;  %v142_v42 = vshll.u32 %v141_v40, 23 }
  0x65   :  { %v143_v43 = vor.u32 4788187, %v142_v42  ;;  %v146_v44 = vcvt.s32.f32 %v139_v41 }
  0x67   :  { %v144_v45 = vand.u32 2147483647, %v143_v43 }
  0x69   :  { %v147_v47 = vmul.f32 %v146_v44, %v144_v45 }
  0x6b   :  { %v148_v48 = vxor.u32 2147483648, %v147_v47 }
  0x6d   :  { %v149_v50 = vsel %vm66_vm8, %v148_v48, %v147_v47 }
  0x6e   :  { %v152_v51 = vsel %vm65_vm9, %v554_v19, %v149_v50 }
  0x6f   :  { %394 = vcosq.f32 %v152_v51 }
  0x70   :  { %396 = vsinq.f32 %v152_v51 }
  0x79   :  { %v395_v55 = vpop.eup %394 }
  0x7a   :  { %v397_v56 = vpop.eup %396  ;;  %v164_v57 = vxor.u32 2147483648, %v395_v55 }
  0x7b   :  { %v161_v58 = vxor.u32 2147483648, %v397_v56 }
  0x7c   :  { %v165_v25 = vsel %vm163_vm10, %v164_v57, %v397_v56 }
  0x7d   :  { %v162_v60 = vsel %vm160_vm11, %v395_v55, %v161_v58 }
  0x7e   :  { %v166_v61 = vsel %vm159_vm12, %v162_v60, %v165_v25 }
  0x7f   :  { %v167_v62 = vsel %vm156_vm13, nan, %v166_v61 }
  0x80   :  { %v168_v63 = vadd.f32 %v167_v62, %v44_v59 }
  0x82   :  { %350 = vmatmul.mubr.f32.vlgmr.msra.gmra.mrb[0].mxu0 %v168_v63 }
 0x155   :  { %v258_v4 = vpop.f32.mrb[0].mxu0 }
 0x156   :  { %v259_v5 = vadd.f32 %v299_v3, %v258_v4  ;;  %v351_v6 = vpop.f32.mrb[1].mxu0 }
 0x158   :  { %v265_v7 = vsel %vm264_vm14, %v259_v5, -inf }
 0x159   :  { %266 = vmax.xlane.f32.xlu0 %v265_v7 }
 0x1e6   :  { %v267_v19 = vpop.xlane.xlu0 %266 }
 0x1e7   :  { %v268_v8 = vsub.f32 %v265_v7, %v267_v19 }
 0x1e9   :  { %v269_v9 = vmul.f32 1.442695, %v268_v8 }
 0x1eb   :  { %398 = vpow2.f32 %v269_v9 }
 0x1f5   :  { %v399_v10 = vpop.eup %398 }
 0x1f6   :  { %271 = vadd.xlane.f32.xlu0 %v399_v10 }
 0x283   :  { %v272_v11 = vpop.xlane.xlu0 %271 }
 0x284   :  { %400 = vlog2.f32 %v272_v11 }
 0x28e   :  { %v401_v12 = vpop.eup %400 }
 0x28f   :  { %v274_v2 = vmul.f32 0.6931472, %v401_v12 }
 0x291   :  { %v275_v13 = vsub.f32 %v268_v8, %v274_v2 }
 0x293   :  { %276 = vst [vmem:[#allocation7] sm:$0xff] %v275_v13 }
 0x294   :  { %457 = shalt.err (!%p454_p6)
}
 0x295   :  { %s458_s22 = scalar_lea.hbm %s600_s4, 128 }
 0x296   :  { %p459_p7 = scmp.ne.s32.totalorder %s600_s4, %s458_s22  ;;  %p462_p8 = scmp.lt.u32.totalorder %s458_s22, %s600_s4 }
 0x298   :  { %p464_p9 = pnand %p462_p8, %p459_p7 }
 0x29a   :  { %467 = shalt.err (!%p464_p9)
}
 0x29b   :  { %286 = dma.vmem_to_hbm [thread:$0]  %s284_s19, 128, %s600_s4, [#allocation4]  }
 0x29c   :  { %472 = dma.done.wait [#allocation4], 128  }
 0x29d   :  { %473 = vsyncadd [#allocation4], 4294967168 }
 0x29e   :  { %290 = vsyncpa [#allocation3], 1 }
 0x29f   :  { %291 = vsyncpa [#allocation6], 1 }
 0x2a0   :  { %292 = vsyncpa [#allocation4], 1 }

</bundles_post_ra>
